<compile_context>
chip_gen: v5e
topology: v5e:2x2
jax: 0.10.0
libtpu: 0.0.40
codegen_flags: <defaults>
</compile_context>

<pallas_src>
import functools

import jax
import jax.numpy as jnp
from jax.experimental import pallas as pl
from jax.experimental.pallas import tpu as pltpu

_MiB = 1024 * 1024


def _round_up(n, m):
    return ((n + m - 1) // m) * m


def _pad_to(x, target_shape):
    pads = [(0, t - s) for s, t in zip(x.shape, target_shape)]
    if all(p == (0, 0) for p in pads):
        return x
    return jnp.pad(x, pads)


def _vmem_cap_bytes():
    """Physical VMEM per TensorCore; falls back to the smallest (v7x, 64 MiB)."""
    try:
        cap = getattr(pltpu.get_tpu_info(), "vmem_capacity_bytes", None)
        if cap:
            return int(cap)
    except Exception:
        pass
    return 64 * _MiB


def _vmem_limit(required_bytes):
    """Size-derived scoped-VMEM limit, capped per generation
    (~56 MiB on v7x's 64 MiB VMEM, up to 100 MiB on v5e/v6e)."""
    cap = min(_vmem_cap_bytes() - 8 * _MiB, 100 * _MiB)
    want = int(required_bytes * 1.3) + 2 * _MiB
    return int(min(max(want, 32 * _MiB), cap))


def _const_spec(block_shape, index_map):
    """BlockSpec for a grid-constant operand; single-buffered when supported
    (double-buffering a constant block is pure VMEM waste)."""
    try:
        return pl.BlockSpec(block_shape, index_map, pipeline_mode=pl.Buffered(1))
    except Exception:
        return pl.BlockSpec(block_shape, index_map)


# --------------------- shared fully-parallel matmul + bias ---------------------
def _matmul_bias_kernel(x_ref, w_ref, b_ref, o_ref):
    o_ref[...] = (jnp.dot(x_ref[...], w_ref[...],
                          preferred_element_type=jnp.float32)
                  + b_ref[...]).astype(o_ref.dtype)


def _pick_tiles(M, N, K, x_bytes, w_bytes, o_bytes, budget):
    tm_cands = [t for t in (512, 256, 128, 64, 32, 16, 8) if M % t == 0] or [M]
    tn_cands = [t for t in (512, 256, 128) if N % t == 0] or [N]
    for tn in tn_cands:
        for tm in tm_cands:
            fp = 2 * (tm * K * x_bytes + K * tn * w_bytes + tn * 4 + tm * tn * o_bytes)
            if fp <= budget:
                return tm, tn, fp
    tm, tn = tm_cands[-1], tn_cands[-1]
    fp = 2 * (tm * K * x_bytes + K * tn * w_bytes + tn * 4 + tm * tn * o_bytes)
    return tm, tn, fp


def _matmul_bias(x, w, b, out_dtype):
    """out[M, N] = x[M, K] @ w[K, N] + b[1, N].

    Grid order: N (output columns) outermost so each weight column-block is
    DMA'd once and held while the (M, K) activations stream -- this minimizes
    re-read HBM traffic for LM-head shapes (N >> K)."""
    M, K = x.shape
    K2, N = w.shape
    assert K == K2
    budget = min(_vmem_cap_bytes() - 16 * _MiB, 80 * _MiB)
    tm, tn, fp = _pick_tiles(M, N, K,
                             jnp.dtype(x.dtype).itemsize,
                             jnp.dtype(w.dtype).itemsize,
                             jnp.dtype(out_dtype).itemsize, budget)
    # TODO(synk): add a K grid axis with an f32 VMEM accumulator when very large
    # K (hidden size) would not fit untiled in the v7x scoped-VMEM budget.
    return pl.pallas_call(
        _matmul_bias_kernel,
        out_shape=jax.ShapeDtypeStruct((M, N), out_dtype),
        grid_spec=pltpu.PrefetchScalarGridSpec(
            num_scalar_prefetch=0,
            grid=(N // tn, M // tm),                          # j (N) outer, i (M) inner
            in_specs=[
                pl.BlockSpec((tm, K), lambda j, i: (i, 0)),   # activations stream
                pl.BlockSpec((K, tn), lambda j, i: (0, j)),   # weight tile, resident per j
                pl.BlockSpec((1, tn), lambda j, i: (0, j)),   # bias tile
            ],
            out_specs=pl.BlockSpec((tm, tn), lambda j, i: (i, j)),
        ),
        compiler_params=pltpu.CompilerParams(
            dimension_semantics=("parallel", "parallel"),
            vmem_limit_bytes=_vmem_limit(fp)),
    )(x, w, b)


# ----------------------------- Pass 1: recurrence ------------------------------
def _rnn_recurrence_kernel(xw_ref, whh_ref, out_ref, h_ref, *, t_chunk, unroll):
    """One grid step == t_chunk RNN timesteps; hidden carry in bf16 VMEM scratch."""

    @pl.when(pl.program_id(0) == 0)
    def _():
        h_ref[...] = jnp.zeros_like(h_ref)

    whh = whh_ref[...]                                   # (H, H) bf16, resident

    def step(i, carry):
        # Serial per-step work: one (B,H)x(H,H) MXU dot + f32 add + tanh.
        pre = xw_ref[i] + jnp.dot(h_ref[...], whh,
                                  preferred_element_type=jnp.float32)
        h_new = jnp.tanh(pre).astype(h_ref.dtype)        # bf16 carry == MXU operand dtype
        h_ref[...] = h_new
        out_ref[i] = h_new
        return carry

    jax.lax.fori_loop(0, t_chunk, step, 0, unroll=unroll)


# --------------------------------- forward -------------------------------------
def rnn_model_forward(tokens, params, *, t_chunk=16, logits_dtype=jnp.float32):
    """tokens: (B, T) int32 -> logits (B, T, V) in `logits_dtype`
    (float32 default; pass bfloat16 to halve the logits writeback, e.g. on v5e)."""
    emb_table = params["embedding"].astype(jnp.bfloat16)          # (Voc, E)
    w_ih_t = params["w_ih_t"].astype(jnp.bfloat16)                # (E, H) == W_ih^T
    w_hh_t = params["w_hh_t"].astype(jnp.bfloat16)                # (H, H) == W_hh^T
    bias = (params["b_ih"] + params["b_hh"]).astype(jnp.float32)  # (1, H) pre-summed
    w_fc_t = params["w_fc_t"].astype(jnp.bfloat16)                # (H, V) == W_fc^T
    b_fc = params["b_fc"].astype(jnp.float32)                     # (1, V)

    B, T = tokens.shape
    Voc, E = emb_table.shape
    H = w_hh_t.shape[0]
    V = w_fc_t.shape[1]

    # Pad: batch -> 16 sublanes (bf16 packs 16 rows/vreg), E/H/V -> 128 lanes,
    # time -> multiple of the chunk size.
    B_p = _round_up(B, 16)
    E_p = _round_up(E, 128)
    H_p = _round_up(H, 128)
    V_p = _round_up(V, 128)
    t_chunk = max(1, min(t_chunk, T))
    T_p = _round_up(T, t_chunk)

    wih_p = _pad_to(w_ih_t, (E_p, H_p))
    whh_p = _pad_to(w_hh_t, (H_p, H_p))
    b_p = _pad_to(bias, (1, H_p))
    wfc_p = _pad_to(w_fc_t, (H_p, V_p))
    bfc_p = _pad_to(b_fc, (1, V_p))

    # Embedding gather, produced directly time-major (no (B,T,E) transpose round
    # trip); the table (Voc rows) is lane-padded instead of the gathered tensor.
    # TODO(synk): fuse the gather into Pass 0 via a PrefetchScalarGridSpec
    # row-gather to avoid materializing the (T, B, E) intermediate at large E.
    tokens_p = _pad_to(tokens, (B_p, T_p))                         # padding uses idx 0 (valid row)
    emb_table_p = _pad_to(emb_table, (Voc, E_p))
    emb_tm = jnp.take(emb_table_p, tokens_p.T, axis=0)             # (T_p, B_p, E_p) bf16

    # ---- Pass 0: hoisted input projection (fully parallel, full MXU tiles) ----
    # xw = emb @ W_ih^T + (b_ih + b_hh), kept f32 so the per-step add is exact.
    M0 = T_p * B_p
    xw = _matmul_bias(emb_tm.reshape(M0, E_p), wih_p, b_p, jnp.float32)
    xw = xw.reshape(T_p, B_p, H_p)

    # ---- Pass 1: serial recurrence h_t = tanh(xw_t + h_{t-1} @ W_hh^T) ----
    # TODO(synk): on v7x with large batches, add a leading "parallel" batch grid
    # axis so both TensorCores run the recurrence phase.
    n_chunks = T_p // t_chunk
    unroll = True if t_chunk <= 16 else 8
    p1_bytes = (2 * t_chunk * B_p * H_p * 4       # xw blocks (double-buffered, f32)
                + H_p * H_p * 2                   # resident W_hh (single-buffered)
                + 2 * t_chunk * B_p * H_p * 2     # out blocks (double-buffered, bf16)
                + B_p * H_p * 2)                  # hidden scratch
    rnn_out = pl.pallas_call(
        functools.partial(_rnn_recurrence_kernel, t_chunk=t_chunk, unroll=unroll),
        out_shape=jax.ShapeDtypeStruct((T_p, B_p, H_p), jnp.bfloat16),
        grid_spec=pltpu.PrefetchScalarGridSpec(
            num_scalar_prefetch=0,
            grid=(n_chunks,),
            in_specs=[
                pl.BlockSpec((t_chunk, B_p, H_p), lambda t: (t, 0, 0)),  # xw chunk
                _const_spec((H_p, H_p), lambda t: (0, 0)),               # W_hh^T (resident)
            ],
            out_specs=pl.BlockSpec((t_chunk, B_p, H_p), lambda t: (t, 0, 0)),
            scratch_shapes=[pltpu.VMEM((B_p, H_p), jnp.bfloat16)],       # hidden state
        ),
        compiler_params=pltpu.CompilerParams(
            dimension_semantics=("arbitrary",),        # time axis is a recurrence
            vmem_limit_bytes=_vmem_limit(p1_bytes)),
    )(xw, whh_p)

    # ---- Pass 2: fc projection, batch-major so the big logits need no transpose ----
    rnn_bt = jnp.transpose(rnn_out, (1, 0, 2))     # (B_p, T_p, H_p) bf16 (cheap: H << V)
    logits_flat = _matmul_bias(rnn_bt.reshape(B_p * T_p, H_p), wfc_p, bfc_p, logits_dtype)
    return logits_flat.reshape(B_p, T_p, V_p)[:B, :T, :V]


# --------------------------------- utilities -----------------------------------
def make_params(key, vocab_size, embed_size, hidden_size):
    ks = jax.random.split(key, 7)
    scale = 0.1
    return {
        "embedding": scale * jax.random.normal(ks[0], (vocab_size, embed_size), jnp.float32),
        "w_ih_t":    scale * jax.random.normal(ks[1], (embed_size, hidden_size), jnp.float32),
        "w_hh_t":    scale * jax.random.normal(ks[2], (hidden_size, hidden_size), jnp.float32),
        "b_ih":      scale * jax.random.normal(ks[3], (1, hidden_size), jnp.float32),
        "b_hh":      scale * jax.random.normal(ks[4], (1, hidden_size), jnp.float32),
        "w_fc_t":    scale * jax.random.normal(ks[5], (hidden_size, vocab_size), jnp.float32),
        "b_fc":      scale * jax.random.normal(ks[6], (1, vocab_size), jnp.float32),
    }


def reference_forward(tokens, params):
    """Pure-JAX f32 reference of the PyTorch forward for verification."""
    emb = jnp.take(params["embedding"], tokens, axis=0)            # (B, T, E)
    B, T, E = emb.shape
    H = params["w_hh_t"].shape[0]

    def step(h, x_t):
        h_new = jnp.tanh(x_t @ params["w_ih_t"] + params["b_ih"]
                         + h @ params["w_hh_t"] + params["b_hh"])
        return h_new, h_new

    h0 = jnp.zeros((B, H), jnp.float32)
    _, hs = jax.lax.scan(step, h0, jnp.transpose(emb, (1, 0, 2)))  # (T, B, H)
    rnn_out = jnp.transpose(hs, (1, 0, 2))                         # (B, T, H)
    return rnn_out @ params["w_fc_t"] + params["b_fc"]             # (B, T, V)


if __name__ == "__main__":
    vocab_size, embed_size, hidden_size = 32, 16, 32
    batch, seq = 2, 8

    key = jax.random.PRNGKey(0)
    k_tok, k_par = jax.random.split(key)
    tokens = jax.random.randint(k_tok, (batch, seq), 0, vocab_size, dtype=jnp.int32)
    params = make_params(k_par, vocab_size, embed_size, hidden_size)

    logits = rnn_model_forward(tokens, params)
    jax.block_until_ready(logits)

    ref = reference_forward(tokens, params)
    assert logits.shape == (batch, seq, vocab_size)
    # bf16 MXU operands / bf16 hidden carry with f32 accumulation -> bf16-level
    # tolerance vs the f32 reference.
    assert jnp.allclose(logits.astype(jnp.float32), ref, atol=3e-2, rtol=3e-2), \
        "mismatch vs reference"

    print("KERNEL_OK")
</pallas_src>

<mosaic_0001>
module attributes {stable_mosaic.version = 11 : i64} {
  func.func @_matmul_bias_kernel(%arg0: i32, %arg1: i32, %arg2: memref<128x128xbf16, #tpu.memory_space<vmem>>, %arg3: memref<128x128xbf16, #tpu.memory_space<vmem>>, %arg4: memref<1x128xf32, #tpu.memory_space<vmem>>, %arg5: memref<128x128xf32, #tpu.memory_space<vmem>>) attributes {dimension_semantics = [#tpu.dimension_semantics<parallel>, #tpu.dimension_semantics<parallel>], iteration_bounds = array<i64: 1, 1>, scalar_prefetch = 0 : i64, scratch_operands = 0 : i64, tpu.core_type = #tpu.core_type<tc>, window_params = [{transform_indices = @transform_0, window_bounds = array<i64: 128, 128>}, {transform_indices = @transform_1, window_bounds = array<i64: 128, 128>}, {transform_indices = @transform_2, window_bounds = array<i64: 1, 128>}, {transform_indices = @transform_3, window_bounds = array<i64: 128, 128>}]} {
    %c0 = arith.constant 0 : index
    %c0_0 = arith.constant 0 : index
    %0 = vector.load %arg2[%c0, %c0_0] : memref<128x128xbf16, #tpu.memory_space<vmem>>, vector<128x128xbf16>
    %c0_1 = arith.constant 0 : index
    %c0_2 = arith.constant 0 : index
    %1 = vector.load %arg3[%c0_1, %c0_2] : memref<128x128xbf16, #tpu.memory_space<vmem>>, vector<128x128xbf16>
    %cst = arith.constant dense<0.000000e+00> : vector<128x128xf32>
    %2 = tpu.matmul %0, %1, %cst {dimension_numbers = #tpu.dot_dimension_numbers<[1], [0], [0], [1], [0, 0, 1, 1], [], []>} : vector<128x128xbf16>, vector<128x128xbf16>, vector<128x128xf32> -> vector<128x128xf32>
    %c0_3 = arith.constant 0 : index
    %c0_4 = arith.constant 0 : index
    %3 = vector.load %arg4[%c0_3, %c0_4] : memref<1x128xf32, #tpu.memory_space<vmem>>, vector<1x128xf32>
    %4 = vector.broadcast %3 : vector<1x128xf32> to vector<128x128xf32>
    %5 = arith.addf %2, %4 : vector<128x128xf32>
    %c0_5 = arith.constant 0 : index
    %c0_6 = arith.constant 0 : index
    %6 = vector.load %arg5[%c0_5, %c0_6] : memref<128x128xf32, #tpu.memory_space<vmem>>, vector<128x128xf32>
    tpu.vector_store %arg5[%c0_5, %c0_6], %5 {strides = array<i32>} : memref<128x128xf32, #tpu.memory_space<vmem>>, vector<128x128xf32>,
    return
  }
  func.func @transform_0(%arg0: i32, %arg1: i32) -> (i32, i32) {
    %c0_i32 = arith.constant 0 : i32
    %c0_i32_0 = arith.constant 0 : i32
    return %arg1, %c0_i32 : i32, i32
  }
  func.func @transform_1(%arg0: i32, %arg1: i32) -> (i32, i32) {
    %c0_i32 = arith.constant 0 : i32
    %c0_i32_0 = arith.constant 0 : i32
    return %c0_i32, %arg0 : i32, i32
  }
  func.func @transform_2(%arg0: i32, %arg1: i32) -> (i32, i32) {
    %c0_i32 = arith.constant 0 : i32
    %c0_i32_0 = arith.constant 0 : i32
    return %c0_i32, %arg0 : i32, i32
  }
  func.func @transform_3(%arg0: i32, %arg1: i32) -> (i32, i32) {
    %c0_i32 = arith.constant 0 : i32
    return %arg1, %arg0 : i32, i32
  }
}

</mosaic_0001>

<bundles_post_ra>
// kernel: tpu_custom_call.1
= control target key start
LH: loop header
LB: loop body
LE: loop exit
PB: predicated region body
PF: predicated region fallthrough
CT: control target
= control target key end

     0   :  { %8 = vsyncpa [#allocation3], 0  ;;  %s493_s0 = inlined_call_operand.hbm [shape: bf16[128,128], index: 0, kind: input, shape index: {}]   ;;  %s494_s1 = inlined_call_operand.hbm [shape: bf16[128,128], index: 1, kind: input, shape index: {}]   ;;  %s495_s2 = inlined_call_operand.vmem [shape: f32[1,128], index: 2, kind: input, shape index: {}]   ;;  %s496_s3 = inlined_call_operand.hbm [shape: f32[128,128], index: 3, kind: output, shape index: {}]  }
   0x1   :  { %9 = vsyncpa [#allocation6], 0 }
   0x2   :  { %10 = vsyncpa [#allocation4], 0  ;;  %s15_s14 = sshll.u32 %s493_s0, 4  ;;  %s454_s15 = smov [#allocation2]   ;;  %s16_s14 = int_to_ptr.hbm [resolvable:$true] %s15_s14 }
   0x3   :  { %s17_s16 = sshll.u32 %s454_s15, 4  ;;  %s28_s19 = sshll.u32 %s494_s1, 4  ;;  %s18_s16 = int_to_ptr.vmem [resolvable:$true] %s17_s16  ;;  %s29_s19 = int_to_ptr.hbm [resolvable:$true] %s28_s19 }
   0x4   :  { %s455_s20 = smov 64   ;;  %s456_s21 = smov 4  }
   0x5   :  { %23 = dma.hbm_to_vmem [thread:$0]  %s16_s14, 1024, %s18_s16, [#allocation3], %s455_s20, %s455_s20, %s456_s21  }
   0x6   :  { %s457_s22 = smov [#allocation5]  }
   0x7   :  { %s30_s23 = sshll.u32 %s457_s22, 4  ;;  %s31_s23 = int_to_ptr.vmem [resolvable:$true] %s30_s23 }
   0x8   :  { %36 = dma.hbm_to_vmem [thread:$0]  %s29_s19, 1024, %s31_s23, [#allocation6], %s455_s20, %s455_s20, %s456_s21  }
   0x9   :  { %448 = dma.done.wait [#allocation3], 1024  }
   0xa   :  { %449 = vsyncadd [#allocation3], 4294966272 }
   0xb   :  { %450 = dma.done.wait [#allocation6], 1024  }
   0xc   :  { %451 = vsyncadd [#allocation6], 4294966272  ;;  %v343_v0 = vld [vmem:[#allocation5 + $0x38] sm:$0xff]  ;;  %v342_v1 = vld [vmem:[#allocation5 + $0x30] sm:$0xff]  ;;  %s250_s27 = sshll.u32 %s496_s3, 4  ;;  %s459_s28 = smov 128   ;;  %s251_s27 = int_to_ptr.hbm [resolvable:$true] %s250_s27 }
   0xd   :  { %179 = vmatpush.bf16.msra.mxu0 %v343_v0  ;;  %344 = vmatpush.bf16.msra.mxu1 %v343_v0  ;;  %v341_v2 = vld [vmem:[#allocation5 + $0x28] sm:$0xff]  ;;  %v340_v3 = vld [vmem:[#allocation5 + $0x20] sm:$0xff]  ;;  %v339_v4 = vld [vmem:[#allocation5 + $0x18] sm:$0xff]  ;;  %s460_s29 = smov 8  }
   0xe   :  { %345 = vmatpush.bf16.msra.mxu2 %v343_v0  ;;  %346 = vmatpush.bf16.msra.mxu3 %v343_v0  ;;  %v338_v5 = vld [vmem:[#allocation5 + $0x10] sm:$0xff]  ;;  %v337_v6 = vld [vmem:[#allocation5 + $0x8] sm:$0xff]  ;;  %v336_v7 = vld [vmem:[#allocation5] sm:$0xff] }
   0xf   :  { %v328_v8 = vld [vmem:[#allocation2] sm:$0xff]  ;;  %v330_v9 = vld [vmem:[#allocation2 + $0x10] sm:$0xff]  ;;  %v329_v12 = vld [vmem:[#allocation2 + $0x8] sm:$0xff] }
  0x10   :  { %v332_v10 = vld [vmem:[#allocation2 + $0x20] sm:$0xff]  ;;  %v334_v11 = vld [vmem:[#allocation2 + $0x30] sm:$0xff]  ;;  %v331_v13 = vld [vmem:[#allocation2 + $0x18] sm:$0xff] }
  0x11   :  { %180 = vmatpush.bf16.msra.mxu0 %v342_v1  ;;  %347 = vmatpush.bf16.msra.mxu1 %v342_v1  ;;  %v333_v14 = vld [vmem:[#allocation2 + $0x28] sm:$0xff]  ;;  %v335_v15 = vld [vmem:[#allocation2 + $0x38] sm:$0xff]  ;;  %v375_v16 = vld [vmem:[%s495_s2] ss:$0 sm:$0xff]  ;;  %s458_s2 = smov [#allocation7]  }
  0x12   :  { %348 = vmatpush.bf16.msra.mxu2 %v342_v1  ;;  %349 = vmatpush.bf16.msra.mxu3 %v342_v1  ;;  %s248_s24 = sshll.u32 %s458_s2, 4  ;;  %s249_s24 = int_to_ptr.vmem [resolvable:$true] %s248_s24 }
  0x15   :  { %181 = vmatpush.bf16.msra.mxu0 %v341_v2  ;;  %350 = vmatpush.bf16.msra.mxu1 %v341_v2 }
  0x16   :  { %351 = vmatpush.bf16.msra.mxu2 %v341_v2  ;;  %352 = vmatpush.bf16.msra.mxu3 %v341_v2 }
  0x19   :  { %182 = vmatpush.bf16.msra.mxu0 %v340_v3  ;;  %353 = vmatpush.bf16.msra.mxu1 %v340_v3 }
  0x1a   :  { %354 = vmatpush.bf16.msra.mxu2 %v340_v3  ;;  %355 = vmatpush.bf16.msra.mxu3 %v340_v3 }
  0x1d   :  { %183 = vmatpush.bf16.msra.mxu0 %v339_v4  ;;  %356 = vmatpush.bf16.msra.mxu1 %v339_v4 }
  0x1e   :  { %357 = vmatpush.bf16.msra.mxu2 %v339_v4  ;;  %358 = vmatpush.bf16.msra.mxu3 %v339_v4 }
  0x21   :  { %184 = vmatpush.bf16.msra.mxu0 %v338_v5  ;;  %359 = vmatpush.bf16.msra.mxu1 %v338_v5 }
  0x22   :  { %360 = vmatpush.bf16.msra.mxu2 %v338_v5  ;;  %361 = vmatpush.bf16.msra.mxu3 %v338_v5 }
  0x25   :  { %185 = vmatpush.bf16.msra.mxu0 %v337_v6  ;;  %362 = vmatpush.bf16.msra.mxu1 %v337_v6 }
  0x26   :  { %363 = vmatpush.bf16.msra.mxu2 %v337_v6  ;;  %364 = vmatpush.bf16.msra.mxu3 %v337_v6 }
  0x29   :  { %186 = vmatpush.bf16.msra.mxu0 %v336_v7  ;;  %365 = vmatpush.bf16.msra.mxu1 %v336_v7 }
  0x2a   :  { %366 = vmatpush.bf16.msra.mxu2 %v336_v7  ;;  %367 = vmatpush.bf16.msra.mxu3 %v336_v7 }
  0x2c   :  { %187 = vmatmul.bf16.vlgmr.msra.gmra.mxu0 %v328_v8  ;;  %197 = vmatmul.bf16.vlgmr.msra.gmra.mxu1 %v330_v9 }
  0x2d   :  { %207 = vmatmul.bf16.vlgmr.msra.gmra.mxu2 %v332_v10  ;;  %217 = vmatmul.bf16.vlgmr.msra.gmra.mxu3 %v334_v11 }
  0x3c   :  { %192 = vmatmul.bf16.gmra.mxu0 %v329_v12  ;;  %202 = vmatmul.bf16.gmra.mxu1 %v331_v13 }
  0x3d   :  { %212 = vmatmul.bf16.gmra.mxu2 %v333_v14  ;;  %222 = vmatmul.bf16.gmra.mxu3 %v335_v15 }
  0xa9   :  { %v188_v17 = vpop.f32.mrf.mxu0  ;;  %v198_v18 = vpop.f32.mrf.mxu1 }
  0xaa   :  { %v189_v19 = vadd.f32 %v375_v16, %v188_v17  ;;  %v199_v20 = vadd.f32 %v375_v16, %v198_v18 }
  0xac   :  { %228 = vst [vmem:[#allocation7] sm:$0xff] %v189_v19 }
  0xad   :  { %232 = vst [vmem:[#allocation7 + $0x20] sm:$0xff] %v199_v20 }
  0xb0   :  { %v208_v21 = vpop.f32.mrf.mxu2  ;;  %v218_v22 = vpop.f32.mrf.mxu3 }
  0xb1   :  { %v209_v23 = vadd.f32 %v375_v16, %v208_v21  ;;  %v219_v24 = vadd.f32 %v375_v16, %v218_v22  ;;  %v190_v25 = vpop.f32.mrf.mxu0  ;;  %v200_v26 = vpop.f32.mrf.mxu1 }
  0xb2   :  { %v191_v27 = vadd.f32 %v375_v16, %v190_v25  ;;  %v201_v28 = vadd.f32 %v375_v16, %v200_v26 }
  0xb3   :  { %236 = vst [vmem:[#allocation7 + $0x40] sm:$0xff] %v209_v23 }
  0xb4   :  { %240 = vst [vmem:[#allocation7 + $0x60] sm:$0xff] %v219_v24 }
  0xb5   :  { %229 = vst [vmem:[#allocation7 + $0x8] sm:$0xff] %v191_v27 }
  0xb6   :  { %233 = vst [vmem:[#allocation7 + $0x28] sm:$0xff] %v201_v28 }
  0xb8   :  { %v210_v29 = vpop.f32.mrf.mxu2  ;;  %v220_v30 = vpop.f32.mrf.mxu3 }
  0xb9   :  { %v211_v31 = vadd.f32 %v375_v16, %v210_v29  ;;  %v221_v32 = vadd.f32 %v375_v16, %v220_v30  ;;  %v193_v33 = vpop.f32.mrf.mxu0  ;;  %v203_v34 = vpop.f32.mrf.mxu1 }
  0xba   :  { %v194_v35 = vadd.f32 %v375_v16, %v193_v33  ;;  %v204_v36 = vadd.f32 %v375_v16, %v203_v34 }
  0xbb   :  { %237 = vst [vmem:[#allocation7 + $0x48] sm:$0xff] %v211_v31 }
  0xbc   :  { %241 = vst [vmem:[#allocation7 + $0x68] sm:$0xff] %v221_v32 }
  0xbd   :  { %230 = vst [vmem:[#allocation7 + $0x10] sm:$0xff] %v194_v35 }
  0xbe   :  { %234 = vst [vmem:[#allocation7 + $0x30] sm:$0xff] %v204_v36 }
  0xc0   :  { %v213_v37 = vpop.f32.mrf.mxu2  ;;  %v223_v38 = vpop.f32.mrf.mxu3 }
  0xc1   :  { %v214_v39 = vadd.f32 %v375_v16, %v213_v37  ;;  %v224_v40 = vadd.f32 %v375_v16, %v223_v38  ;;  %v195_v41 = vpop.f32.mrf.mxu0  ;;  %v205_v42 = vpop.f32.mrf.mxu1 }
  0xc2   :  { %v196_v43 = vadd.f32 %v375_v16, %v195_v41  ;;  %v206_v44 = vadd.f32 %v375_v16, %v205_v42 }
  0xc3   :  { %238 = vst [vmem:[#allocation7 + $0x50] sm:$0xff] %v214_v39 }
  0xc4   :  { %242 = vst [vmem:[#allocation7 + $0x70] sm:$0xff] %v224_v40 }
  0xc5   :  { %231 = vst [vmem:[#allocation7 + $0x18] sm:$0xff] %v196_v43 }
  0xc6   :  { %235 = vst [vmem:[#allocation7 + $0x38] sm:$0xff] %v206_v44 }
  0xc8   :  { %v215_v45 = vpop.f32.mrf.mxu2  ;;  %v225_v46 = vpop.f32.mrf.mxu3 }
  0xc9   :  { %v216_v47 = vadd.f32 %v375_v16, %v215_v45  ;;  %v226_v48 = vadd.f32 %v375_v16, %v225_v46 }
  0xcb   :  { %239 = vst [vmem:[#allocation7 + $0x58] sm:$0xff] %v216_v47 }
  0xcc   :  { %243 = vst [vmem:[#allocation7 + $0x78] sm:$0xff] %v226_v48 }
  0xcd   :  { %256 = dma.vmem_to_hbm [thread:$0]  %s249_s24, 2048, %s251_s27, [#allocation4], %s459_s28, %s459_s28, %s460_s29  }
  0xce   :  { %452 = dma.done.wait [#allocation4], 2048  }
  0xcf   :  { %453 = vsyncadd [#allocation4], 4294965248 }
  0xd0   :  { %261 = vsyncpa [#allocation3], 1 }
  0xd1   :  { %262 = vsyncpa [#allocation6], 1 }
  0xd2   :  { %263 = vsyncpa [#allocation4], 1 }

</bundles_post_ra>
